<compile_context>
chip_gen: v7x
topology: tpu7x:2x2x1
jax: 0.10.0
libtpu: 0.0.40
codegen_flags: <defaults>
</compile_context>

<pallas_src>
import jax
import jax.numpy as jnp
from jax.experimental import pallas as pl
from jax.experimental.pallas import tpu as pltpu

N_FEATURES = 48
LANE = 128
SUBLANE = 8


def _round_up(x, m):
    return ((x + m - 1) // m) * m


def _mlp_kernel(x_ref, w1_ref, b1_ref, w2_ref, b2_ref, o_ref):
    # x_ref : (TB, K)   bf16  gathered & flattened embeddings for this batch tile
    # w1_ref: (K, Hp)   bf16  hidden-layer weight (VMEM resident)
    # b1_ref: (1, Hp)   f32
    # w2_ref: (Hp, Lp)  bf16  output-layer weight (VMEM resident)
    # b2_ref: (1, Lp)   f32
    # o_ref : (TB, Lp)  f32   lane-dense output tile
    h = jnp.dot(x_ref[...], w1_ref[...], preferred_element_type=jnp.float32)
    # Dropout -> identity (eval mode); ReLU.
    h = jnp.maximum(h + b1_ref[...], 0.0).astype(jnp.bfloat16)
    o_ref[...] = (jnp.dot(h, w2_ref[...], preferred_element_type=jnp.float32)
                  + b2_ref[...]).astype(o_ref.dtype)


def parsing_model_forward(t, embedding, w1, b1, w2, b2, *, batch_tile=256):
    """t: (B, 48) int token ids. Linear weights pre-transposed as (in, out).
    Returns logits (B, label_num) f32."""
    B, n_feat = t.shape
    V, E = embedding.shape
    K, H = w1.shape
    H2, L = w2.shape
    assert n_feat == N_FEATURES and K == n_feat * E and H2 == H

    # Lane / sublane friendly padded sizes.
    Hp = _round_up(H, LANE)
    Lp = _round_up(L, LANE)
    TB = min(batch_tile, _round_up(B, SUBLANE))
    Bp = _round_up(B, TB)

    # ---- wrapper-side prep (zero padding keeps logits exact) ----
    # Embedding gather via XLA: memory-bound and tiny compared with the W1
    # matmul; doing it on the MXU via one-hots costs O(B*48*V*E) extra flops.
    emb_bf = embedding.astype(jnp.bfloat16)
    x = jnp.take(emb_bf, t.astype(jnp.int32), axis=0).reshape(B, K)
    x_p = jnp.zeros((Bp, K), jnp.bfloat16).at[:B, :].set(x)

    w1_p = jnp.zeros((K, Hp), jnp.bfloat16).at[:, :H].set(w1.astype(jnp.bfloat16))
    b1_p = jnp.zeros((1, Hp), jnp.float32).at[0, :H].set(b1.astype(jnp.float32))
    w2_p = jnp.zeros((Hp, Lp), jnp.bfloat16).at[:H, :L].set(w2.astype(jnp.bfloat16))
    b2_p = jnp.zeros((1, Lp), jnp.float32).at[0, :L].set(b2.astype(jnp.float32))

    out = pl.pallas_call(
        _mlp_kernel,
        out_shape=jax.ShapeDtypeStruct((Bp, Lp), jnp.float32),
        grid=(Bp // TB,),
        in_specs=[
            pl.BlockSpec((TB, K), lambda i: (i, 0)),     # activations, tiled over batch
            pl.BlockSpec((K, Hp), lambda i: (0, 0)),     # W1 (resident)
            pl.BlockSpec((1, Hp), lambda i: (0, 0)),     # b1
            pl.BlockSpec((Hp, Lp), lambda i: (0, 0)),    # W2 (resident)
            pl.BlockSpec((1, Lp), lambda i: (0, 0)),     # b2
        ],
        out_specs=pl.BlockSpec((TB, Lp), lambda i: (i, 0)),
        compiler_params=pltpu.CompilerParams(
            dimension_semantics=("parallel",),           # shard batch tiles across TCs
        ),
    )(x_p, w1_p, b1_p, w2_p, b2_p)

    return out[:B, :L]


def reference_forward(t, embedding, w1, b1, w2, b2):
    """Pure-JAX reference with matching bf16 casts (f32 accumulation)."""
    B = t.shape[0]
    emb_bf = embedding.astype(jnp.bfloat16).astype(jnp.float32)
    w1_bf = w1.astype(jnp.bfloat16).astype(jnp.float32)
    w2_bf = w2.astype(jnp.bfloat16).astype(jnp.float32)
    x = jnp.take(emb_bf, t, axis=0).reshape(B, -1)
    h = jnp.maximum(x @ w1_bf + b1, 0.0)
    h = h.astype(jnp.bfloat16).astype(jnp.float32)
    return h @ w2_bf + b2


if __name__ == "__main__":
    # Small shapes consistent with the module (n_features fixed at 48 by the
    # 'embedding_size * 48' in __init__); other dims kept small for the demo.
    words_num = 100
    label_num = 16
    embedding_size = 32
    hidden_size = 64
    batch = 2

    key = jax.random.PRNGKey(0)
    k_emb, k_w1, k_b1, k_w2, k_b2, k_t = jax.random.split(key, 6)

    embedding = jax.random.normal(k_emb, (words_num, embedding_size), jnp.float32)
    w1 = jax.random.normal(
        k_w1, (embedding_size * N_FEATURES, hidden_size), jnp.float32) * 0.02
    b1 = jax.random.normal(k_b1, (hidden_size,), jnp.float32) * 0.02
    w2 = jax.random.normal(k_w2, (hidden_size, label_num), jnp.float32) * 0.02
    b2 = jax.random.normal(k_b2, (label_num,), jnp.float32) * 0.02

    t = jax.random.randint(k_t, (batch, N_FEATURES), 0, words_num, jnp.int32)

    logits = parsing_model_forward(t, embedding, w1, b1, w2, b2)
    logits = jax.block_until_ready(logits)

    ref = reference_forward(t, embedding, w1, b1, w2, b2)
    assert logits.shape == (batch, label_num)
    assert jnp.allclose(logits, ref, atol=2e-3, rtol=2e-3), float(
        jnp.max(jnp.abs(logits - ref)))

    print("KERNEL_OK")
</pallas_src>

<mosaic_0001>
module attributes {stable_mosaic.version = 11 : i64} {
  func.func @_mlp_kernel(%arg0: i32, %arg1: memref<8x1536xbf16, #tpu.memory_space<vmem>>, %arg2: memref<1536x128xbf16, #tpu.memory_space<vmem>>, %arg3: memref<1x128xf32, #tpu.memory_space<vmem>>, %arg4: memref<128x128xbf16, #tpu.memory_space<vmem>>, %arg5: memref<1x128xf32, #tpu.memory_space<vmem>>, %arg6: memref<8x128xf32, #tpu.memory_space<vmem>>) attributes {dimension_semantics = [#tpu.dimension_semantics<parallel>], iteration_bounds = array<i64: 1>, scalar_prefetch = 0 : i64, scratch_operands = 0 : i64, tpu.core_type = #tpu.core_type<tc>, window_params = [{transform_indices = @transform_0, window_bounds = array<i64: 8, 1536>}, {pipeline_mode = #tpu.pipeline_mode<synchronous>, transform_indices = @transform_1, window_bounds = array<i64: 1536, 128>}, {pipeline_mode = #tpu.pipeline_mode<synchronous>, transform_indices = @transform_2, window_bounds = array<i64: 1, 128>}, {pipeline_mode = #tpu.pipeline_mode<synchronous>, transform_indices = @transform_3, window_bounds = array<i64: 128, 128>}, {pipeline_mode = #tpu.pipeline_mode<synchronous>, transform_indices = @transform_4, window_bounds = array<i64: 1, 128>}, {transform_indices = @transform_5, window_bounds = array<i64: 8, 128>}]} {
    %c0 = arith.constant 0 : index
    %c0_0 = arith.constant 0 : index
    %0 = vector.load %arg1[%c0, %c0_0] : memref<8x1536xbf16, #tpu.memory_space<vmem>>, vector<8x1536xbf16>
    %c0_1 = arith.constant 0 : index
    %c0_2 = arith.constant 0 : index
    %1 = vector.load %arg2[%c0_1, %c0_2] : memref<1536x128xbf16, #tpu.memory_space<vmem>>, vector<1536x128xbf16>
    %cst = arith.constant dense<0.000000e+00> : vector<8x128xf32>
    %2 = tpu.matmul %0, %1, %cst {dimension_numbers = #tpu.dot_dimension_numbers<[1], [0], [0], [1], [0, 0, 1, 1], [], []>} : vector<8x1536xbf16>, vector<1536x128xbf16>, vector<8x128xf32> -> vector<8x128xf32>
    %c0_3 = arith.constant 0 : index
    %c0_4 = arith.constant 0 : index
    %3 = vector.load %arg3[%c0_3, %c0_4] : memref<1x128xf32, #tpu.memory_space<vmem>>, vector<1x128xf32>
    %4 = vector.broadcast %3 : vector<1x128xf32> to vector<8x128xf32>
    %5 = arith.addf %2, %4 : vector<8x128xf32>
    %cst_5 = arith.constant 0.000000e+00 : f32
    %6 = vector.broadcast %cst_5 : f32 to vector<8x128xf32>
    %7 = arith.maximumf %5, %6 : vector<8x128xf32>
    %8 = arith.truncf %7 : vector<8x128xf32> to vector<8x128xbf16>
    %c0_6 = arith.constant 0 : index
    %c0_7 = arith.constant 0 : index
    %9 = vector.load %arg4[%c0_6, %c0_7] : memref<128x128xbf16, #tpu.memory_space<vmem>>, vector<128x128xbf16>
    %cst_8 = arith.constant dense<0.000000e+00> : vector<8x128xf32>
    %10 = tpu.matmul %8, %9, %cst_8 {dimension_numbers = #tpu.dot_dimension_numbers<[1], [0], [0], [1], [0, 0, 1, 1], [], []>} : vector<8x128xbf16>, vector<128x128xbf16>, vector<8x128xf32> -> vector<8x128xf32>
    %c0_9 = arith.constant 0 : index
    %c0_10 = arith.constant 0 : index
    %11 = vector.load %arg5[%c0_9, %c0_10] : memref<1x128xf32, #tpu.memory_space<vmem>>, vector<1x128xf32>
    %12 = vector.broadcast %11 : vector<1x128xf32> to vector<8x128xf32>
    %13 = arith.addf %10, %12 : vector<8x128xf32>
    %c0_11 = arith.constant 0 : index
    %c0_12 = arith.constant 0 : index
    %14 = vector.load %arg6[%c0_11, %c0_12] : memref<8x128xf32, #tpu.memory_space<vmem>>, vector<8x128xf32>
    tpu.vector_store %arg6[%c0_11, %c0_12], %13 {strides = array<i32>} : memref<8x128xf32, #tpu.memory_space<vmem>>, vector<8x128xf32>,
    return
  }
  func.func @transform_0(%arg0: i32) -> (i32, i32) {
    %c0_i32 = arith.constant 0 : i32
    %c0_i32_0 = arith.constant 0 : i32
    return %arg0, %c0_i32 : i32, i32
  }
  func.func @transform_1(%arg0: i32) -> (i32, i32) {
    %c0_i32 = arith.constant 0 : i32
    %c0_i32_0 = arith.constant 0 : i32
    %c0_i32_1 = arith.constant 0 : i32
    return %c0_i32, %c0_i32_0 : i32, i32
  }
  func.func @transform_2(%arg0: i32) -> (i32, i32) {
    %c0_i32 = arith.constant 0 : i32
    %c0_i32_0 = arith.constant 0 : i32
    %c0_i32_1 = arith.constant 0 : i32
    return %c0_i32, %c0_i32_0 : i32, i32
  }
  func.func @transform_3(%arg0: i32) -> (i32, i32) {
    %c0_i32 = arith.constant 0 : i32
    %c0_i32_0 = arith.constant 0 : i32
    %c0_i32_1 = arith.constant 0 : i32
    return %c0_i32, %c0_i32_0 : i32, i32
  }
  func.func @transform_4(%arg0: i32) -> (i32, i32) {
    %c0_i32 = arith.constant 0 : i32
    %c0_i32_0 = arith.constant 0 : i32
    %c0_i32_1 = arith.constant 0 : i32
    return %c0_i32, %c0_i32_0 : i32, i32
  }
  func.func @transform_5(%arg0: i32) -> (i32, i32) {
    %c0_i32 = arith.constant 0 : i32
    %c0_i32_0 = arith.constant 0 : i32
    return %arg0, %c0_i32 : i32, i32
  }
}

</mosaic_0001>

<bundles_post_ra>
// kernel: tpu_custom_call.1
= control target key start
LH: loop header
LB: loop body
LE: loop exit
PB: predicated region body
PF: predicated region fallthrough
CT: control target
= control target key end

     0   :  { %10 = vsyncpa [#allocation3], 0  ;;  %s1849_s0 = inlined_call_operand.hbm [shape: bf16[8,1536], index: 0, kind: input, shape index: {}]   ;;  %s1850_s1 = inlined_call_operand.hbm [shape: bf16[1536,128], index: 1, kind: input, shape index: {}]   ;;  %s1851_s2 = inlined_call_operand.vmem [shape: f32[1,128], index: 2, kind: input, shape index: {}]   ;;  %s1852_s3 = inlined_call_operand.hbm [shape: bf16[128,128], index: 3, kind: input, shape index: {}]   ;;  %s1853_s4 = inlined_call_operand.vmem [shape: f32[1,128], index: 4, kind: input, shape index: {}]   ;;  %s1854_s5 = inlined_call_operand.hbm [shape: f32[8,128], index: 5, kind: output, shape index: {}]  }
   0x1   :  { %11 = vsyncpa [#allocation6], 0 }
   0x2   :  { %12 = vsyncpa [#allocation4], 0  ;;  %s1751_s18 = smov [#allocation5]   ;;  %s1657_s22 = scalar_lea.hbm %s1850_s1, 12288 }
   0x3   :  { %s28_s19 = sshll.u32 %s1751_s18, 4  ;;  %p1658_p0 = scmp.ne.s32.totalorder %s1850_s1, %s1657_s22  ;;  %s29_s19 = int_to_ptr.vmem [resolvable:$true] %s28_s19 }
   0x4   :  { %p1661_p1 = scmp.lt.u32.totalorder %s1657_s22, %s1850_s1 }
   0x6   :  { %p1663_p2 = pnand %p1661_p1, %p1658_p0 }
   0x8   :  { %1666 = shalt.err (!%p1663_p2)
}
   0x9   :  { %s1667_s27 = scalar_lea.vmem %s29_s19, 12288  ;;  %p1672_p4 = scmp.lt.s32.totalorder %s29_s19, %s29_s19 }
   0xa   :  { %p1668_p3 = scmp.ne.s32.totalorder %s29_s19, %s1667_s27  ;;  %p1673_p5 = scmp.lt.s32.totalorder %s1667_s27, %s1667_s27 }
   0xc   :  { %p1674_p6 = por %p1673_p5, %p1672_p4 }
   0xe   :  { %p1675_p7 = pnand %p1674_p6, %p1668_p3 }
  0x10   :  { %1678 = shalt.err (!%p1675_p7)
}
  0x11   :  { %s1752_s28 = smov 64   ;;  %s1753_s29 = smov 4  }
  0x12   :  { %34 = dma.hbm_to_vmem [thread:$0]  %s1850_s1, 12288, %s29_s19, [#allocation6], %s1752_s28, %s1752_s28, %s1753_s29  }
  0x13   :  { %s1754_s7 = smov [#allocation2]   ;;  %s1755_s9 = smov [#allocation7]  }
  0x14   :  { %s19_s8 = sshll.u32 %s1754_s7, 4  ;;  %s42_s10 = sshll.u32 %s1755_s9, 4  ;;  %s20_s8 = int_to_ptr.vmem [resolvable:$true] %s19_s8  ;;  %s43_s10 = int_to_ptr.vmem [resolvable:$true] %s42_s10 }
  0x15   :  { %s1679_s13 = scalar_lea.hbm %s1849_s0, 768 }
  0x16   :  { %p1680_p8 = scmp.ne.s32.totalorder %s1849_s0, %s1679_s13  ;;  %p1683_p9 = scmp.lt.u32.totalorder %s1679_s13, %s1849_s0 }
  0x18   :  { %p1685_p10 = pnand %p1683_p9, %p1680_p8 }
  0x1a   :  { %1688 = shalt.err (!%p1685_p10)
}
  0x1b   :  { %s1689_s1 = scalar_lea.vmem %s20_s8, 768  ;;  %p1694_p12 = scmp.lt.s32.totalorder %s20_s8, %s20_s8 }
  0x1c   :  { %p1690_p11 = scmp.ne.s32.totalorder %s20_s8, %s1689_s1  ;;  %p1695_p13 = scmp.lt.s32.totalorder %s1689_s1, %s1689_s1 }
  0x1e   :  { %p1696_p0 = por %p1695_p13, %p1694_p12 }
  0x20   :  { %p1697_p1 = pnand %p1696_p0, %p1690_p11 }
  0x22   :  { %1700 = shalt.err (!%p1697_p1)
}
  0x23   :  { %22 = dma.hbm_to_vmem [thread:$0]  %s1849_s0, 768, %s20_s8, [#allocation3]  }
  0x24   :  { %s1701_s22 = scalar_lea.hbm %s1852_s3, 1024 }
  0x25   :  { %p1702_p2 = scmp.ne.s32.totalorder %s1852_s3, %s1701_s22  ;;  %p1705_p3 = scmp.lt.u32.totalorder %s1701_s22, %s1852_s3 }
  0x27   :  { %p1707_p4 = pnand %p1705_p3, %p1702_p2 }
  0x29   :  { %1710 = shalt.err (!%p1707_p4)
}
  0x2a   :  { %s1711_s27 = scalar_lea.vmem %s43_s10, 1024  ;;  %p1716_p6 = scmp.lt.s32.totalorder %s43_s10, %s43_s10 }
  0x2b   :  { %p1712_p5 = scmp.ne.s32.totalorder %s43_s10, %s1711_s27  ;;  %p1717_p7 = scmp.lt.s32.totalorder %s1711_s27, %s1711_s27 }
  0x2d   :  { %p1718_p8 = por %p1717_p7, %p1716_p6 }
  0x2f   :  { %p1719_p9 = pnand %p1718_p8, %p1712_p5 }
  0x31   :  { %1722 = shalt.err (!%p1719_p9)
}
  0x32   :  { %48 = dma.hbm_to_vmem [thread:$0]  %s1852_s3, 1024, %s43_s10, [#allocation6], %s1752_s28, %s1752_s28, %s1753_s29  }
  0x33   :  { %1745 = dma.done.wait [#allocation3], 768  }
  0x34   :  { %1746 = vsyncadd [#allocation3], 4294966528 }
  0x35   :  { %1747 = dma.done.wait [#allocation6], 13312  }
  0x36   :  { %1748 = vsyncadd [#allocation6], 4294953984  ;;  %v1541_v0 = vld [vmem:[#allocation5 + $0x40] sm:$0xff]   ;;  %v1545_v4 = vld [vmem:[#allocation5 + $0x48] sm:$0xff]   ;;  %vm1757_vm0 = vmmov 0   ;;  %s1758_s6 = smov [#allocation8]  }
  0x37   :  { %v1542_v1 = vld [vmem:[#allocation5 + $0xc0] sm:$0xff]   ;;  %1372 = vmatprep.subr.bf16.mxu0 %v1541_v0  ;;  %v1546_v5 = vld [vmem:[#allocation5 + $0xc8] sm:$0xff]   ;;  %v1549_v8 = vld [vmem:[#allocation5 + $0x50] sm:$0xff]   ;;  %s1244_s7 = sshll.u32 %s1758_s6, 4  ;;  %s1245_s7 = int_to_ptr.vmem [resolvable:$true] %s1244_s7 }
  0x38   :  { %v1543_v2 = vld [vmem:[#allocation5] sm:$0xff]   ;;  %1394 = vmatprep.subr.bf16.mxu1 %v1542_v1  ;;  %v1547_v6 = vld [vmem:[#allocation5 + $0x8] sm:$0xff]   ;;  %v1550_v9 = vld [vmem:[#allocation5 + $0xd0] sm:$0xff]   ;;  %s1723_s8 = scalar_lea.vmem %s1245_s7, 128  ;;  %p1728_p11 = scmp.lt.s32.totalorder %s1245_s7, %s1245_s7 }
  0x39   :  { %v1544_v3 = vld [vmem:[#allocation5 + $0x80] sm:$0xff]   ;;  %1373 = vmatpush3.bf16.msra.mxu0 %v1543_v2  ;;  %v1548_v7 = vld [vmem:[#allocation5 + $0x88] sm:$0xff]   ;;  %v1551_v10 = vld [vmem:[#allocation5 + $0x10] sm:$0xff]   ;;  %p1724_p10 = scmp.ne.s32.totalorder %s1245_s7, %s1723_s8  ;;  %p1729_p12 = scmp.lt.s32.totalorder %s1723_s8, %s1723_s8 }
  0x3a   :  { %1395 = vmatpush3.bf16.msra.mxu1 %v1544_v3  ;;  %1374 = vmatprep.subr.bf16.mxu0 %v1545_v4  ;;  %v1552_v11 = vld [vmem:[#allocation5 + $0x90] sm:$0xff]   ;;  %v1553_v12 = vld [vmem:[#allocation5 + $0x58] sm:$0xff]   ;;  %v1557_v16 = vld [vmem:[#allocation5 + $0x60] sm:$0xff]  }
  0x3b   :  { %1396 = vmatprep.subr.bf16.mxu1 %v1546_v5  ;;  %v1554_v13 = vld [vmem:[#allocation5 + $0xd8] sm:$0xff]   ;;  %v1558_v17 = vld [vmem:[#allocation5 + $0xe0] sm:$0xff]   ;;  %v1561_v20 = vld [vmem:[#allocation5 + $0x68] sm:$0xff]   ;;  %p1730_p13 = por %p1729_p12, %p1728_p11 }
  0x3c   :  { %v1555_v14 = vld [vmem:[#allocation5 + $0x18] sm:$0xff]   ;;  %v1559_v18 = vld [vmem:[#allocation5 + $0x20] sm:$0xff]   ;;  %v1562_v21 = vld [vmem:[#allocation5 + $0xe8] sm:$0xff]  }
  0x3d   :  { %1375 = vmatpush3.bf16.msra.mxu0 %v1547_v6  ;;  %v1556_v15 = vld [vmem:[#allocation5 + $0x98] sm:$0xff]   ;;  %v1560_v19 = vld [vmem:[#allocation5 + $0xa0] sm:$0xff]   ;;  %v1563_v22 = vld [vmem:[#allocation5 + $0x28] sm:$0xff]   ;;  %p1731_p0 = pnand %p1730_p13, %p1724_p10 }
  0x3e   :  { %1397 = vmatpush3.bf16.msra.mxu1 %v1548_v7  ;;  %1376 = vmatprep.subr.bf16.mxu0 %v1549_v8  ;;  %v1564_v23 = vld [vmem:[#allocation5 + $0xa8] sm:$0xff]   ;;  %v1565_v24 = vld [vmem:[#allocation5 + $0x70] sm:$0xff]   ;;  %v1569_v28 = vld [vmem:[#allocation5 + $0x78] sm:$0xff]  }
  0x3f   :  { %1398 = vmatprep.subr.bf16.mxu1 %v1550_v9  ;;  %v1566_v25 = vld [vmem:[#allocation5 + $0xf0] sm:$0xff]   ;;  %v1570_v29 = vld [vmem:[#allocation5 + $0xf8] sm:$0xff]   ;;  %v1577_v38 = vld [vmem:[#allocation5 + $0x140] sm:$0xff]  }
  0x40   :  { %v1567_v26 = vld [vmem:[#allocation5 + $0x30] sm:$0xff]   ;;  %v1571_v30 = vld [vmem:[#allocation5 + $0x38] sm:$0xff]   ;;  %v1578_v39 = vld [vmem:[#allocation5 + $0x1c0] sm:$0xff]  }
  0x41   :  { %1377 = vmatpush3.bf16.msra.mxu0 %v1551_v10  ;;  %v1568_v27 = vld [vmem:[#allocation5 + $0xb0] sm:$0xff]   ;;  %v1572_v31 = vld [vmem:[#allocation5 + $0xb8] sm:$0xff]   ;;  %v1579_v40 = vld [vmem:[#allocation5 + $0x100] sm:$0xff]  }
  0x42   :  { %1399 = vmatpush3.bf16.msra.mxu1 %v1552_v11  ;;  %1378 = vmatprep.subr.bf16.mxu0 %v1553_v12  ;;  %v61_v32 = vld [vmem:[#allocation2] sm:$0xff]  ;;  %v62_v33 = vld [vmem:[#allocation2 + $0x8] sm:$0xff]  ;;  %v1580_v41 = vld [vmem:[#allocation5 + $0x180] sm:$0xff]  }
  0x43   :  { %1400 = vmatprep.subr.bf16.mxu1 %v1554_v13  ;;  %v1255_v34 = vcombine.low %v61_v32, %v61_v32  ;;  %v1256_v35 = vcombine.high %v61_v32, %v61_v32  ;;  %v1257_v36 = vcombine.low %v62_v33, %v62_v33  ;;  %v1258_v37 = vcombine.high %v62_v33, %v62_v33  ;;  %v1581_v42 = vld [vmem:[#allocation5 + $0x148] sm:$0xff]   ;;  %v1585_v46 = vld [vmem:[#allocation5 + $0x150] sm:$0xff]   ;;  %v1589_v50 = vld [vmem:[#allocation5 + $0x158] sm:$0xff]  }
  0x44   :  { %v1582_v43 = vld [vmem:[#allocation5 + $0x1c8] sm:$0xff]   ;;  %v1586_v47 = vld [vmem:[#allocation5 + $0x1d0] sm:$0xff]   ;;  %v1590_v51 = vld [vmem:[#allocation5 + $0x1d8] sm:$0xff]  }
  0x45   :  { %1379 = vmatpush3.bf16.msra.mxu0 %v1555_v14  ;;  %916 = vmatprep.mubr.bf16.mxu0 %v1256_v35  ;;  %v1583_v44 = vld [vmem:[#allocation5 + $0x108] sm:$0xff]   ;;  %v1587_v48 = vld [vmem:[#allocation5 + $0x110] sm:$0xff]   ;;  %v1591_v52 = vld [vmem:[#allocation5 + $0x118] sm:$0xff]  }
  0x46   :  { %1401 = vmatpush3.bf16.msra.mxu1 %v1556_v15  ;;  %1380 = vmatprep.subr.bf16.mxu0 %v1557_v16  ;;  %v1584_v45 = vld [vmem:[#allocation5 + $0x188] sm:$0xff]   ;;  %v1588_v49 = vld [vmem:[#allocation5 + $0x190] sm:$0xff]   ;;  %v1592_v53 = vld [vmem:[#allocation5 + $0x198] sm:$0xff]  }
  0x47   :  { %1402 = vmatprep.subr.bf16.mxu1 %v1558_v17  ;;  %956 = vmatprep.mubr.bf16.mxu1 %v1258_v37  ;;  %v1593_v54 = vld [vmem:[#allocation5 + $0x160] sm:$0xff]   ;;  %v1597_v58 = vld [vmem:[#allocation5 + $0x168] sm:$0xff]   ;;  %v1601_v62 = vld [vmem:[#allocation5 + $0x170] sm:$0xff]  }
  0x48   :  { %v1594_v55 = vld [vmem:[#allocation5 + $0x1e0] sm:$0xff]   ;;  %v1598_v59 = vld [vmem:[#allocation5 + $0x1e8] sm:$0xff]   ;;  %v1602_v63 = vld [vmem:[#allocation5 + $0x1f0] sm:$0xff]  }
  0x49   :  { %1381 = vmatpush3.bf16.msra.mxu0 %v1559_v18  ;;  %v1595_v56 = vld [vmem:[#allocation5 + $0x120] sm:$0xff]   ;;  %v1599_v60 = vld [vmem:[#allocation5 + $0x128] sm:$0xff]   ;;  %v1603_v0 = vld [vmem:[#allocation5 + $0x130] sm:$0xff]  }
  0x4a   :  { %1403 = vmatpush3.bf16.msra.mxu1 %v1560_v19  ;;  %1382 = vmatprep.subr.bf16.mxu0 %v1561_v20  ;;  %v1596_v57 = vld [vmem:[#allocation5 + $0x1a0] sm:$0xff]   ;;  %v1600_v61 = vld [vmem:[#allocation5 + $0x1a8] sm:$0xff]   ;;  %v1604_v1 = vld [vmem:[#allocation5 + $0x1b0] sm:$0xff]  }
  0x4b   :  { %1404 = vmatprep.subr.bf16.mxu1 %v1562_v21  ;;  %v1605_v2 = vld [vmem:[#allocation5 + $0x178] sm:$0xff]   ;;  %v63_v6 = vld [vmem:[#allocation2 + $0x10] sm:$0xff]  ;;  %v64_v9 = vld [vmem:[#allocation2 + $0x18] sm:$0xff] }
  0x4c   :  { %v1606_v3 = vld [vmem:[#allocation5 + $0x1f8] sm:$0xff]   ;;  %v1259_v7 = vcombine.low %v63_v6, %v63_v6  ;;  %v1260_v8 = vcombine.high %v63_v6, %v63_v6  ;;  %v1261_v10 = vcombine.low %v64_v9, %v64_v9  ;;  %v1262_v11 = vcombine.high %v64_v9, %v64_v9  ;;  %v1613_v12 = vld [vmem:[#allocation5 + $0x240] sm:$0xff]   ;;  %v1617_v16 = vld [vmem:[#allocation5 + $0x248] sm:$0xff]  }
  0x4d   :  { %1383 = vmatpush3.bf16.msra.mxu0 %v1563_v22  ;;  %v1607_v4 = vld [vmem:[#allocation5 + $0x138] sm:$0xff]   ;;  %v1614_v13 = vld [vmem:[#allocation5 + $0x2c0] sm:$0xff]   ;;  %v1618_v17 = vld [vmem:[#allocation5 + $0x2c8] sm:$0xff]  }
  0x4e   :  { %1405 = vmatpush3.bf16.msra.mxu1 %v1564_v23  ;;  %1384 = vmatprep.subr.bf16.mxu0 %v1565_v24  ;;  %v1608_v5 = vld [vmem:[#allocation5 + $0x1b8] sm:$0xff]   ;;  %v1615_v14 = vld [vmem:[#allocation5 + $0x200] sm:$0xff]   ;;  %v1619_v18 = vld [vmem:[#allocation5 + $0x208] sm:$0xff]  }
  0x4f   :  { %1406 = vmatprep.subr.bf16.mxu1 %v1566_v25  ;;  %v1616_v15 = vld [vmem:[#allocation5 + $0x280] sm:$0xff]   ;;  %v1620_v19 = vld [vmem:[#allocation5 + $0x288] sm:$0xff]   ;;  %v1621_v20 = vld [vmem:[#allocation5 + $0x250] sm:$0xff]  }
  0x50   :  { %v1622_v21 = vld [vmem:[#allocation5 + $0x2d0] sm:$0xff]   ;;  %v1625_v24 = vld [vmem:[#allocation5 + $0x258] sm:$0xff]   ;;  %v1633_v32 = vld [vmem:[#allocation5 + $0x268] sm:$0xff]  }
  0x51   :  { %1385 = vmatpush3.bf16.msra.mxu0 %v1567_v26  ;;  %v1623_v22 = vld [vmem:[#allocation5 + $0x210] sm:$0xff]   ;;  %v1626_v25 = vld [vmem:[#allocation5 + $0x2d8] sm:$0xff]   ;;  %v1634_v33 = vld [vmem:[#allocation5 + $0x2e8] sm:$0xff]  }
  0x52   :  { %1407 = vmatpush3.bf16.msra.mxu1 %v1568_v27  ;;  %1386 = vmatprep.subr.bf16.mxu0 %v1569_v28  ;;  %v1624_v23 = vld [vmem:[#allocation5 + $0x290] sm:$0xff]   ;;  %v1627_v26 = vld [vmem:[#allocation5 + $0x218] sm:$0xff]   ;;  %v1629_v28 = vld [vmem:[#allocation5 + $0x260] sm:$0xff]  }
  0x53   :  { %1408 = vmatprep.subr.bf16.mxu1 %v1570_v29  ;;  %v1628_v27 = vld [vmem:[#allocation5 + $0x298] sm:$0xff]   ;;  %v1630_v29 = vld [vmem:[#allocation5 + $0x2e0] sm:$0xff]   ;;  %v1636_v35 = vld [vmem:[#allocation5 + $0x2a8] sm:$0xff]  }
  0x54   :  { %v1638_v37 = vld [vmem:[#allocation5 + $0x2f0] sm:$0xff]  }
  0x55   :  { %1387 = vmatpush3.bf16.msra.mxu0 %v1571_v30  ;;  %v1631_v30 = vld [vmem:[#allocation5 + $0x220] sm:$0xff]  }
  0x56   :  { %1409 = vmatpush3.bf16.msra.mxu1 %v1572_v31  ;;  %1416 = vmatprep.subr.bf16.mxu0 %v1577_v38  ;;  %v1632_v31 = vld [vmem:[#allocation5 + $0x2a0] sm:$0xff]   ;;  %v1639_v38 = vld [vmem:[#allocation5 + $0x230] sm:$0xff]  }
  0x57   :  { %1438 = vmatprep.subr.bf16.mxu1 %v1578_v39  ;;  %v1640_v39 = vld [vmem:[#allocation5 + $0x2b0] sm:$0xff]  }
  0x58   :  { %917 = vmatmul.mubr.bf16.vlgmr.msra.gmra.mrb[0].mxu0 %v1255_v34  ;;  %v1635_v34 = vld [vmem:[#allocation5 + $0x228] sm:$0xff]  }
  0x59   :  { %957 = vmatmul.mubr.bf16.vlgmr.msra.gmra.mrb[0].mxu1 %v1257_v36  ;;  %1417 = vmatpush3.bf16.msra.mxu0 %v1579_v40  ;;  %v1637_v36 = vld [vmem:[#allocation5 + $0x270] sm:$0xff]   ;;  %v1641_v40 = vld [vmem:[#allocation5 + $0x278] sm:$0xff]  }
  0x5a   :  { %1439 = vmatpush3.bf16.msra.mxu1 %v1580_v41  ;;  %1418 = vmatprep.subr.bf16.mxu0 %v1581_v42  ;;  %v1642_v41 = vld [vmem:[#allocation5 + $0x2f8] sm:$0xff]  }
  0x5b   :  { %1440 = vmatprep.subr.bf16.mxu1 %v1582_v43  ;;  %996 = vmatprep.mubr.bf16.mxu0 %v1260_v8  ;;  %v1643_v42 = vld [vmem:[#allocation5 + $0x238] sm:$0xff]  }
  0x5c   :  { %1036 = vmatprep.mubr.bf16.mxu1 %v1262_v11  ;;  %v1644_v43 = vld [vmem:[#allocation5 + $0x2b8] sm:$0xff]  }
  0x5d   :  { %1419 = vmatpush3.bf16.msra.mxu0 %v1583_v44  ;;  %v65_v44 = vld [vmem:[#allocation2 + $0x20] sm:$0xff] }
  0x5e   :  { %1441 = vmatpush3.bf16.msra.mxu1 %v1584_v45  ;;  %1420 = vmatprep.subr.bf16.mxu0 %v1585_v46  ;;  %v66_v45 = vld [vmem:[#allocation2 + $0x28] sm:$0xff]  ;;  %v1263_v46 = vcombine.low %v65_v44, %v65_v44 }
  0x5f   :  { %1442 = vmatprep.subr.bf16.mxu1 %v1586_v47  ;;  %v1264_v47 = vcombine.high %v65_v44, %v65_v44 }
  0x61   :  { %1421 = vmatpush3.bf16.msra.mxu0 %v1587_v48  ;;  %v1265_v48 = vcombine.low %v66_v45, %v66_v45 }
  0x62   :  { %1443 = vmatpush3.bf16.msra.mxu1 %v1588_v49  ;;  %1422 = vmatprep.subr.bf16.mxu0 %v1589_v50  ;;  %v1266_v49 = vcombine.high %v66_v45, %v66_v45  ;;  %v1649_v50 = vld [vmem:[#allocation7] sm:$0xff]  }
  0x63   :  { %1444 = vmatprep.subr.bf16.mxu1 %v1590_v51  ;;  %v1756_v51 = vmov 0.0  }
  0x65   :  { %1423 = vmatpush3.bf16.msra.mxu0 %v1591_v52  ;;  %v1650_v52 = vld [vmem:[#allocation7 + $0x8] sm:$0xff]  }
  0x66   :  { %1445 = vmatpush3.bf16.msra.mxu1 %v1592_v53  ;;  %1424 = vmatprep.subr.bf16.mxu0 %v1593_v54  ;;  %v1651_v53 = vld [vmem:[#allocation7 + $0x10] sm:$0xff]   ;;  %v1652_v54 = vld [vmem:[#allocation7 + $0x18] sm:$0xff]  }
  0x67   :  { %1446 = vmatprep.subr.bf16.mxu1 %v1594_v55  ;;  %v1653_v55 = vld [vmem:[#allocation7 + $0x20] sm:$0xff]  }
  0x69   :  { %1425 = vmatpush3.bf16.msra.mxu0 %v1595_v56  ;;  %v1654_v56 = vld [vmem:[#allocation7 + $0x28] sm:$0xff]  }
  0x6a   :  { %1447 = vmatpush3.bf16.msra.mxu1 %v1596_v57  ;;  %1426 = vmatprep.subr.bf16.mxu0 %v1597_v58  ;;  %v1655_v57 = vld [vmem:[#allocation7 + $0x30] sm:$0xff]   ;;  %v1656_v58 = vld [vmem:[#allocation7 + $0x38] sm:$0xff]  }
  0x6b   :  { %1448 = vmatprep.subr.bf16.mxu1 %v1598_v59 }
  0x6d   :  { %1427 = vmatpush3.bf16.msra.mxu0 %v1599_v60 }
  0x6e   :  { %1449 = vmatpush3.bf16.msra.mxu1 %v1600_v61  ;;  %1428 = vmatprep.subr.bf16.mxu0 %v1601_v62  ;;  %v1254_v61 = vld [vmem:[%s1851_s2] ss:$0 sm:$0xff] }
  0x6f   :  { %1450 = vmatprep.subr.bf16.mxu1 %v1602_v63 }
  0x71   :  { %1429 = vmatpush3.bf16.msra.mxu0 %v1603_v0 }
  0x72   :  { %1451 = vmatpush3.bf16.msra.mxu1 %v1604_v1  ;;  %1430 = vmatprep.subr.bf16.mxu0 %v1605_v2 }
  0x73   :  { %1452 = vmatprep.subr.bf16.mxu1 %v1606_v3 }
  0x75   :  { %1431 = vmatpush3.bf16.msra.mxu0 %v1607_v4 }
  0x76   :  { %1453 = vmatpush3.bf16.msra.mxu1 %v1608_v5  ;;  %1460 = vmatprep.subr.bf16.mxu0 %v1613_v12 }
  0x77   :  { %1482 = vmatprep.subr.bf16.mxu1 %v1614_v13 }
  0x78   :  { %997 = vmatmul.mubr.bf16.vlgmr.msra.gmra.mrb[4].mxu0 %v1259_v7 }
  0x79   :  { %1037 = vmatmul.mubr.bf16.vlgmr.msra.gmra.mrb[4].mxu1 %v1261_v10  ;;  %1461 = vmatpush3.bf16.msra.mxu0 %v1615_v14 }
  0x7a   :  { %1483 = vmatpush3.bf16.msra.mxu1 %v1616_v15  ;;  %1462 = vmatprep.subr.bf16.mxu0 %v1617_v16 }
  0x7b   :  { %1484 = vmatprep.subr.bf16.mxu1 %v1618_v17  ;;  %1076 = vmatprep.mubr.bf16.mxu0 %v1264_v47 }
  0x7c   :  { %1116 = vmatprep.mubr.bf16.mxu1 %v1266_v49 }
  0x7d   :  { %1463 = vmatpush3.bf16.msra.mxu0 %v1619_v18 }
  0x7e   :  { %1485 = vmatpush3.bf16.msra.mxu1 %v1620_v19  ;;  %1464 = vmatprep.subr.bf16.mxu0 %v1621_v20 }
  0x7f   :  { %1486 = vmatprep.subr.bf16.mxu1 %v1622_v21 }
  0x81   :  { %1465 = vmatpush3.bf16.msra.mxu0 %v1623_v22 }
  0x82   :  { %1487 = vmatpush3.bf16.msra.mxu1 %v1624_v23  ;;  %1466 = vmatprep.subr.bf16.mxu0 %v1625_v24 }
  0x83   :  { %1488 = vmatprep.subr.bf16.mxu1 %v1626_v25 }
  0x85   :  { %1467 = vmatpush3.bf16.msra.mxu0 %v1627_v26 }
  0x86   :  { %1489 = vmatpush3.bf16.msra.mxu1 %v1628_v27  ;;  %1468 = vmatprep.subr.bf16.mxu0 %v1629_v28 }
  0x87   :  { %1490 = vmatprep.subr.bf16.mxu1 %v1630_v29 }
  0x89   :  { %1469 = vmatpush3.bf16.msra.mxu0 %v1631_v30 }
  0x8a   :  { %1491 = vmatpush3.bf16.msra.mxu1 %v1632_v31  ;;  %1470 = vmatprep.subr.bf16.mxu0 %v1633_v32 }
  0x8b   :  { %1492 = vmatprep.subr.bf16.mxu1 %v1634_v33 }
  0x8d   :  { %1471 = vmatpush3.bf16.msra.mxu0 %v1635_v34  ;;  %v1363_v34 = vld [vmem:[%s1853_s4] ss:$0 sm:$0xff] }
  0x8e   :  { %1493 = vmatpush3.bf16.msra.mxu1 %v1636_v35  ;;  %1472 = vmatprep.subr.bf16.mxu0 %v1637_v36 }
  0x8f   :  { %1494 = vmatprep.subr.bf16.mxu1 %v1638_v37 }
  0x91   :  { %1473 = vmatpush3.bf16.msra.mxu0 %v1639_v38 }
  0x92   :  { %1495 = vmatpush3.bf16.msra.mxu1 %v1640_v39  ;;  %1474 = vmatprep.subr.bf16.mxu0 %v1641_v40 }
  0x93   :  { %1496 = vmatprep.subr.bf16.mxu1 %v1642_v41 }
  0x95   :  { %1475 = vmatpush3.bf16.msra.mxu0 %v1643_v42 }
  0x96   :  { %1497 = vmatpush3.bf16.msra.mxu1 %v1644_v43  ;;  %1513 = vmatprep.subr.bf16.mxu0 %v1756_v51 }
  0x98   :  { %1077 = vmatmul.mubr.bf16.vlgmr.msra.gmra.mrb[8].mxu0 %v1263_v46 }
  0x99   :  { %1117 = vmatmul.mubr.bf16.vlgmr.msra.gmra.mrb[8].mxu1 %v1265_v48  ;;  %1514 = vmatpush3.bf16.msra.mxu0 %v1649_v50 }
  0x9a   :  { %1515 = vmatprep.subr.bf16.mxu0 %v1756_v51  ;;  %1529 = vmatprep.mubr.msk.bf16.mxu0 %vm1757_vm0, %v1756_v51 }
  0x9d   :  { %1516 = vmatpush3.bf16.msra.mxu0 %v1650_v52 }
  0x9e   :  { %1517 = vmatprep.subr.bf16.mxu0 %v1756_v51 }
  0xa1   :  { %1518 = vmatpush3.bf16.msra.mxu0 %v1651_v53 }
  0xa2   :  { %1519 = vmatprep.subr.bf16.mxu0 %v1756_v51 }
  0xa5   :  { %1520 = vmatpush3.bf16.msra.mxu0 %v1652_v54 }
  0xa6   :  { %1521 = vmatprep.subr.bf16.mxu0 %v1756_v51 }
  0xa9   :  { %1522 = vmatpush3.bf16.msra.mxu0 %v1653_v55 }
  0xaa   :  { %1523 = vmatprep.subr.bf16.mxu0 %v1756_v51 }
  0xad   :  { %1524 = vmatpush3.bf16.msra.mxu0 %v1654_v56 }
  0xae   :  { %1525 = vmatprep.subr.bf16.mxu0 %v1756_v51 }
  0xb1   :  { %1526 = vmatpush3.bf16.msra.mxu0 %v1655_v57 }
  0xb2   :  { %1527 = vmatprep.subr.bf16.mxu0 %v1756_v51 }
  0xb5   :  { %1528 = vmatpush3.bf16.msra.mxu0 %v1656_v58 }
 0x12b   :  { %v1388_v59 = vpop.f32.mrb[0].mxu0 }
 0x12c   :  { %v1410_v60 = vpop.f32.mrb[0].mxu1  ;;  %v1389_v62 = vpop.f32.mrb[1].mxu0 }
 0x12d   :  { %v1411_v63 = vpop.f32.mrb[1].mxu1  ;;  %v1390_v0 = vadd.f32 %v1389_v62, %v1388_v59  ;;  %v1391_v2 = vpop.f32.mrb[2].mxu0 }
 0x12e   :  { %v1412_v1 = vadd.f32 %v1411_v63, %v1410_v60  ;;  %v1413_v3 = vpop.f32.mrb[2].mxu1  ;;  %v1392_v4 = vpop.f32.mrb[3].mxu0 }
 0x12f   :  { %v1414_v5 = vpop.f32.mrb[3].mxu1  ;;  %v919_v6 = vadd.f32 %v1390_v0, %v1254_v61 }
 0x131   :  { %v959_v7 = vadd.f32 %v1412_v1, %v919_v6 }
 0x14b   :  { %v1432_v8 = vpop.f32.mrb[4].mxu0 }
 0x14c   :  { %v1454_v9 = vpop.f32.mrb[4].mxu1  ;;  %v1433_v10 = vpop.f32.mrb[5].mxu0 }
 0x14d   :  { %v1455_v11 = vpop.f32.mrb[5].mxu1  ;;  %v1434_v12 = vadd.f32 %v1433_v10, %v1432_v8  ;;  %v1435_v14 = vpop.f32.mrb[6].mxu0 }
 0x14e   :  { %v1456_v13 = vadd.f32 %v1455_v11, %v1454_v9  ;;  %v1457_v15 = vpop.f32.mrb[6].mxu1  ;;  %v1436_v16 = vpop.f32.mrb[7].mxu0 }
 0x14f   :  { %v1458_v17 = vpop.f32.mrb[7].mxu1  ;;  %v999_v18 = vadd.f32 %v1434_v12, %v959_v7 }
 0x151   :  { %v1039_v19 = vadd.f32 %v1456_v13, %v999_v18 }
 0x16b   :  { %v1476_v20 = vpop.f32.mrb[8].mxu0 }
 0x16c   :  { %v1498_v21 = vpop.f32.mrb[8].mxu1  ;;  %v1477_v22 = vpop.f32.mrb[9].mxu0 }
 0x16d   :  { %v1478_v23 = vadd.f32 %v1477_v22, %v1476_v20  ;;  %v1499_v24 = vpop.f32.mrb[9].mxu1  ;;  %v1479_v25 = vpop.f32.mrb[10].mxu0 }
 0x16e   :  { %v1500_v26 = vadd.f32 %v1499_v24, %v1498_v21  ;;  %v1501_v27 = vpop.f32.mrb[10].mxu1  ;;  %v1480_v28 = vpop.f32.mrb[11].mxu0 }
 0x16f   :  { %v1079_v29 = vadd.f32 %v1478_v23, %v1039_v19  ;;  %v1502_v30 = vpop.f32.mrb[11].mxu1 }
 0x171   :  { %v1119_v31 = vadd.f32 %v1500_v26, %v1079_v29 }
 0x173   :  { %v1124_v32 = vmax.f32 %v1119_v31, 0.0 }
 0x175   :  { %v1125_v33 = vpack.c.bf16 %v1124_v32, %v1124_v32 }
 0x177   :  { %1530 = vmatmul.mubr.bf16.vlgmr.msra.gmra.mrb[12].mxu0 %v1125_v33 }
 0x24a   :  { %v1231_v35 = vpop.f32.mrb[12].mxu0 }
 0x24b   :  { %v1232_v36 = vadd.f32 %v1363_v34, %v1231_v35  ;;  %v1531_v37 = vpop.f32.mrb[13].mxu0 }
 0x24c   :  { %v1234_v38 = vpop.f32.mrb[14].mxu0 }
 0x24d   :  { %1237 = vst [vmem:[#allocation8] sm:$0xff] %v1232_v36  ;;  %v1532_v39 = vpop.f32.mrb[15].mxu0 }
 0x24e   :  { %1734 = shalt.err (!%p1731_p0)
}
 0x24f   :  { %s1735_s4 = scalar_lea.hbm %s1854_s5, 128 }
 0x250   :  { %p1736_p1 = scmp.ne.s32.totalorder %s1854_s5, %s1735_s4  ;;  %p1739_p2 = scmp.lt.u32.totalorder %s1735_s4, %s1854_s5 }
 0x252   :  { %p1741_p3 = pnand %p1739_p2, %p1736_p1 }
 0x254   :  { %1744 = shalt.err (!%p1741_p3)
}
 0x255   :  { %1247 = dma.vmem_to_hbm [thread:$0]  %s1245_s7, 128, %s1854_s5, [#allocation4]  }
 0x256   :  { %1749 = dma.done.wait [#allocation4], 128  }
 0x257   :  { %1750 = vsyncadd [#allocation4], 4294967168 }
 0x258   :  { %1251 = vsyncpa [#allocation3], 1 }
 0x259   :  { %1252 = vsyncpa [#allocation6], 1 }
 0x25a   :  { %1253 = vsyncpa [#allocation4], 1 }

</bundles_post_ra>
